<compile_context>
chip_gen: v7x
topology: tpu7x:2x2x1
jax: 0.10.0
libtpu: 0.0.40
codegen_flags: <defaults>
</compile_context>

<pallas_src>
import functools

import jax
import jax.numpy as jnp
from jax import lax
from jax.experimental import pallas as pl
from jax.experimental.pallas import tpu as pltpu

# Contract the last dim of both operands (A @ B^T) -- the MXU "NT" form.
_NT_DIMS = (((1,), (1,)), ((), ()))


def _sigmoid_eup(h):
    # sigmoid(x) = 0.5 * (1 + tanh(x/2)); tanh lowers to the EUP slot, leaving
    # only one mul + one add of VALU work per element.
    return 0.5 * (jnp.tanh(0.5 * h) + 1.0)


def fnn_kernel(x_ref, w1_ref, b1_ref, w2_ref, b2_ref, w3_ref, b3_ref, o_ref,
               *, chunk, n_chunks):
    # x_ref : (block_m, 4) row-major batch tile (batch on sublanes, feat on lanes)
    # o_ref : (1, block_m) lane-dense output row (batch on lanes)
    # Weights are PyTorch (out_features, in_features); biases (out_features, 1)
    # broadcast over the lane (batch) axis.
    w1 = w1_ref[...]
    b1 = b1_ref[...]
    w2 = w2_ref[...]
    b2 = b2_ref[...]
    w3 = w3_ref[...]
    b3 = b3_ref[...]

    # Statically-unrolled chunk loop (equivalent to fori_loop(unroll=True) with a
    # static trip count): per-chunk h1/h2 are (HN, chunk<=512) f32 tiles, keeping
    # the live set within the vreg file while the big BlockSpec tile amortizes
    # per-grid-step overhead and DMA.
    for c in range(n_chunks):
        lo = c * chunk
        xc = x_ref[lo:lo + chunk, :]                                  # (chunk, 4)
        # h1^T = W1 @ x^T : contract x's feature dim directly (no transpose pass)
        h1 = lax.dot_general(w1, xc, _NT_DIMS,
                             preferred_element_type=jnp.float32)      # (HN1, chunk)
        h1 = _sigmoid_eup(h1 + b1)
        h2 = jnp.dot(w2, h1, preferred_element_type=jnp.float32)      # (HN2, chunk)
        h2 = _sigmoid_eup(h2 + b2)
        y = jnp.dot(w3, h2, preferred_element_type=jnp.float32)       # (1, chunk)
        o_ref[:, lo:lo + chunk] = (y + b3).astype(o_ref.dtype)        # lane-dense store


def _round_up(n, m):
    return ((n + m - 1) // m) * m


def _choose_block_m(B, *, max_block=2048, chunk=512):
    """B-aware batch tile.

    Aims for >=2 grid steps when B allows (v7x dual-TensorCore sharding), caps the
    tile at `max_block` (per-step double-buffered VMEM stays < ~0.3 MiB, safe on
    v5e/v6e 128 MiB and v7x 64 MiB), and keeps tiles larger than one chunk an
    exact multiple of `chunk` for the in-kernel loop.
    """
    bm = _round_up(max(pl.cdiv(B, 2), 1), 128)
    bm = min(bm, max_block)
    if bm > chunk:
        bm = min(_round_up(bm, chunk), max_block)
    return max(bm, 128)


def fnn_forward(x, params, *, block_m=None, chunk=512):
    """x: (B, 4) float32.  params: PyTorch-oriented weights (out,in) / biases (out,1)."""
    w1, b1, w2, b2, w3, b3 = (params["w1"], params["b1"], params["w2"],
                              params["b2"], params["w3"], params["b3"])
    B, Din = x.shape
    HN1, HN2, Dout = w1.shape[0], w2.shape[0], w3.shape[0]
    assert Dout == 1  # fnn_net's fc3 always maps to a single output

    if block_m is None:
        block_m = _choose_block_m(B, chunk=chunk)
    assert block_m % 128 == 0, "block_m must be a multiple of 128 (lane width)"
    chunk = min(chunk, block_m)
    assert block_m % chunk == 0, "block_m must be a multiple of the inner chunk"
    n_chunks = block_m // chunk
    n_blocks = pl.cdiv(B, block_m)

    weight_bytes = 4 * (HN1 * Din + HN1 + HN2 * HN1 + HN2 + Dout * HN2 + Dout)
    cost = pl.CostEstimate(
        flops=2 * B * (Din * HN1 + HN1 * HN2 + HN2 * Dout),
        transcendentals=B * (HN1 + HN2),               # one tanh per hidden unit
        bytes_accessed=4 * B * (Din + Dout) + weight_bytes,
    )

    kernel = functools.partial(fnn_kernel, chunk=chunk, n_chunks=n_chunks)

    out = pl.pallas_call(
        kernel,
        out_shape=jax.ShapeDtypeStruct((Dout, B), x.dtype),
        grid_spec=pltpu.PrefetchScalarGridSpec(
            num_scalar_prefetch=0,
            grid=(n_blocks,),
            in_specs=[
                # x: row-major batch tiles; last (edge) block may read past B --
                # garbage stays column-isolated and its output writes are dropped.
                pl.BlockSpec((block_m, Din), lambda i: (i, 0)),
                # weights / biases: grid-invariant full blocks (VMEM-resident)
                pl.BlockSpec((HN1, Din), lambda i: (0, 0)),
                pl.BlockSpec((HN1, 1), lambda i: (0, 0)),
                pl.BlockSpec((HN2, HN1), lambda i: (0, 0)),
                pl.BlockSpec((HN2, 1), lambda i: (0, 0)),
                pl.BlockSpec((Dout, HN2), lambda i: (0, 0)),
                pl.BlockSpec((Dout, 1), lambda i: (0, 0)),
            ],
            out_specs=pl.BlockSpec((Dout, block_m), lambda i: (0, i)),
        ),
        compiler_params=pltpu.CompilerParams(
            dimension_semantics=("parallel",)),
        cost_estimate=cost,
    )(x, w1, b1, w2, b2, w3, b3)

    # (1, B) lane-dense result -> PyTorch (B, 1) via reshape (no transpose op).
    return jnp.reshape(out, (B, Dout))


def init_params(key, HN1, HN2):
    """Deterministic synthetic params; PyTorch nn.Linear orientation (out, in)."""
    k1, k2, k3, k4, k5, k6 = jax.random.split(key, 6)
    return {
        "w1": jax.random.normal(k1, (HN1, 4), jnp.float32) * 0.5,
        "b1": jax.random.normal(k2, (HN1, 1), jnp.float32) * 0.1,
        "w2": jax.random.normal(k3, (HN2, HN1), jnp.float32) * 0.5,
        "b2": jax.random.normal(k4, (HN2, 1), jnp.float32) * 0.1,
        "w3": jax.random.normal(k5, (1, HN2), jnp.float32) * 0.5,
        "b3": jax.random.normal(k6, (1, 1), jnp.float32) * 0.1,
    }


def fnn_ref(x, p):
    """Pure-JAX reference of the PyTorch forward (exact sigmoid)."""
    h1 = jax.nn.sigmoid(x @ p["w1"].T + p["b1"].T)
    h2 = jax.nn.sigmoid(h1 @ p["w2"].T + p["b2"].T)
    return h2 @ p["w3"].T + p["b3"].T


if __name__ == "__main__":
    HN1, HN2 = 32, 32
    key = jax.random.PRNGKey(0)
    kp, kx = jax.random.split(key)
    params = init_params(kp, HN1, HN2)

    # B=300  -> block_m=256, 2 grid steps, single-chunk tile, edge block.
    # B=1500 -> block_m=1024, 2 grid steps, in-kernel 2-chunk loop, edge block.
    for B in (300, 1500):
        x = jax.random.normal(jax.random.fold_in(kx, B), (B, 4), jnp.float32)
        out = jax.block_until_ready(fnn_forward(x, params))
        ref = fnn_ref(x, params)
        assert out.shape == (B, 1)
        assert jnp.allclose(out, ref, atol=1e-4, rtol=1e-4), \
            f"mismatch vs reference (B={B})"

    print("KERNEL_OK")
</pallas_src>

<mosaic_0001>
module attributes {stable_mosaic.version = 11 : i64} {
  func.func @fnn_kernel(%arg0: i32, %arg1: memref<256x4xf32, #tpu.memory_space<vmem>>, %arg2: memref<32x4xf32, #tpu.memory_space<vmem>>, %arg3: memref<32x1xf32, #tpu.memory_space<vmem>>, %arg4: memref<32x32xf32, #tpu.memory_space<vmem>>, %arg5: memref<32x1xf32, #tpu.memory_space<vmem>>, %arg6: memref<1x32xf32, #tpu.memory_space<vmem>>, %arg7: memref<1x1xf32, #tpu.memory_space<vmem>>, %arg8: memref<1x256xf32, #tpu.memory_space<vmem>>) attributes {dimension_semantics = [#tpu.dimension_semantics<parallel>], iteration_bounds = array<i64: 2>, scalar_prefetch = 0 : i64, scratch_operands = 0 : i64, tpu.core_type = #tpu.core_type<tc>, window_params = [{transform_indices = @transform_0, window_bounds = array<i64: 256, 4>}, {pipeline_mode = #tpu.pipeline_mode<synchronous>, transform_indices = @transform_1, window_bounds = array<i64: 32, 4>}, {pipeline_mode = #tpu.pipeline_mode<synchronous>, transform_indices = @transform_2, window_bounds = array<i64: 32, 1>}, {pipeline_mode = #tpu.pipeline_mode<synchronous>, transform_indices = @transform_3, window_bounds = array<i64: 32, 32>}, {pipeline_mode = #tpu.pipeline_mode<synchronous>, transform_indices = @transform_4, window_bounds = array<i64: 32, 1>}, {pipeline_mode = #tpu.pipeline_mode<synchronous>, transform_indices = @transform_5, window_bounds = array<i64: 1, 32>}, {pipeline_mode = #tpu.pipeline_mode<synchronous>, transform_indices = @transform_6, window_bounds = array<i64: 1, 1>}, {transform_indices = @transform_7, window_bounds = array<i64: 1, 256>}]} {
    %c0 = arith.constant 0 : index
    %c0_0 = arith.constant 0 : index
    %0 = vector.load %arg2[%c0, %c0_0] : memref<32x4xf32, #tpu.memory_space<vmem>>, vector<32x4xf32>
    %c0_1 = arith.constant 0 : index
    %c0_2 = arith.constant 0 : index
    %1 = vector.load %arg3[%c0_1, %c0_2] : memref<32x1xf32, #tpu.memory_space<vmem>>, vector<32x1xf32>
    %c0_3 = arith.constant 0 : index
    %c0_4 = arith.constant 0 : index
    %2 = vector.load %arg4[%c0_3, %c0_4] : memref<32x32xf32, #tpu.memory_space<vmem>>, vector<32x32xf32>
    %c0_5 = arith.constant 0 : index
    %c0_6 = arith.constant 0 : index
    %3 = vector.load %arg5[%c0_5, %c0_6] : memref<32x1xf32, #tpu.memory_space<vmem>>, vector<32x1xf32>
    %c0_7 = arith.constant 0 : index
    %c0_8 = arith.constant 0 : index
    %4 = vector.load %arg6[%c0_7, %c0_8] : memref<1x32xf32, #tpu.memory_space<vmem>>, vector<1x32xf32>
    %c0_9 = arith.constant 0 : index
    %c0_10 = arith.constant 0 : index
    %5 = vector.load %arg7[%c0_9, %c0_10] : memref<1x1xf32, #tpu.memory_space<vmem>>, vector<1x1xf32>
    %c0_11 = arith.constant 0 : index
    %c0_12 = arith.constant 0 : index
    %6 = vector.load %arg1[%c0_11, %c0_12] : memref<256x4xf32, #tpu.memory_space<vmem>>, vector<256x4xf32>
    %cst = arith.constant dense<0.000000e+00> : vector<32x256xf32>
    %7 = tpu.matmul %0, %6, %cst {dimension_numbers = #tpu.dot_dimension_numbers<[1], [1], [0], [0], [0, 0, 1, 0], [], []>} : vector<32x4xf32>, vector<256x4xf32>, vector<32x256xf32> -> vector<32x256xf32>
    %8 = vector.broadcast %1 : vector<32x1xf32> to vector<32x256xf32>
    %9 = arith.addf %7, %8 : vector<32x256xf32>
    %cst_13 = arith.constant 5.000000e-01 : f32
    %10 = vector.broadcast %cst_13 : f32 to vector<32x256xf32>
    %11 = arith.mulf %10, %9 : vector<32x256xf32>
    %12 = math.tanh %11 : vector<32x256xf32>
    %cst_14 = arith.constant 1.000000e+00 : f32
    %13 = vector.broadcast %cst_14 : f32 to vector<32x256xf32>
    %14 = arith.addf %12, %13 : vector<32x256xf32>
    %cst_15 = arith.constant 5.000000e-01 : f32
    %15 = vector.broadcast %cst_15 : f32 to vector<32x256xf32>
    %16 = arith.mulf %15, %14 : vector<32x256xf32>
    %cst_16 = arith.constant dense<0.000000e+00> : vector<32x256xf32>
    %17 = tpu.matmul %2, %16, %cst_16 {dimension_numbers = #tpu.dot_dimension_numbers<[1], [0], [0], [1], [0, 0, 1, 1], [], []>} : vector<32x32xf32>, vector<32x256xf32>, vector<32x256xf32> -> vector<32x256xf32>
    %18 = vector.broadcast %3 : vector<32x1xf32> to vector<32x256xf32>
    %19 = arith.addf %17, %18 : vector<32x256xf32>
    %cst_17 = arith.constant 5.000000e-01 : f32
    %20 = vector.broadcast %cst_17 : f32 to vector<32x256xf32>
    %21 = arith.mulf %20, %19 : vector<32x256xf32>
    %22 = math.tanh %21 : vector<32x256xf32>
    %cst_18 = arith.constant 1.000000e+00 : f32
    %23 = vector.broadcast %cst_18 : f32 to vector<32x256xf32>
    %24 = arith.addf %22, %23 : vector<32x256xf32>
    %cst_19 = arith.constant 5.000000e-01 : f32
    %25 = vector.broadcast %cst_19 : f32 to vector<32x256xf32>
    %26 = arith.mulf %25, %24 : vector<32x256xf32>
    %cst_20 = arith.constant dense<0.000000e+00> : vector<1x256xf32>
    %27 = tpu.matmul %4, %26, %cst_20 {dimension_numbers = #tpu.dot_dimension_numbers<[1], [0], [0], [1], [0, 0, 1, 1], [], []>} : vector<1x32xf32>, vector<32x256xf32>, vector<1x256xf32> -> vector<1x256xf32>
    %28 = vector.broadcast %5 : vector<1x1xf32> to vector<1x256xf32>
    %29 = arith.addf %27, %28 : vector<1x256xf32>
    %c0_21 = arith.constant 0 : index
    %c0_22 = arith.constant 0 : index
    %30 = vector.load %arg8[%c0_21, %c0_22] : memref<1x256xf32, #tpu.memory_space<vmem>>, vector<1x256xf32>
    tpu.vector_store %arg8[%c0_21, %c0_22], %29 {strides = array<i32>} : memref<1x256xf32, #tpu.memory_space<vmem>>, vector<1x256xf32>,
    return
  }
  func.func @transform_0(%arg0: i32) -> (i32, i32) {
    %c0_i32 = arith.constant 0 : i32
    %c0_i32_0 = arith.constant 0 : i32
    return %arg0, %c0_i32 : i32, i32
  }
  func.func @transform_1(%arg0: i32) -> (i32, i32) {
    %c0_i32 = arith.constant 0 : i32
    %c0_i32_0 = arith.constant 0 : i32
    %c0_i32_1 = arith.constant 0 : i32
    return %c0_i32, %c0_i32_0 : i32, i32
  }
  func.func @transform_2(%arg0: i32) -> (i32, i32) {
    %c0_i32 = arith.constant 0 : i32
    %c0_i32_0 = arith.constant 0 : i32
    %c0_i32_1 = arith.constant 0 : i32
    return %c0_i32, %c0_i32_0 : i32, i32
  }
  func.func @transform_3(%arg0: i32) -> (i32, i32) {
    %c0_i32 = arith.constant 0 : i32
    %c0_i32_0 = arith.constant 0 : i32
    %c0_i32_1 = arith.constant 0 : i32
    return %c0_i32, %c0_i32_0 : i32, i32
  }
  func.func @transform_4(%arg0: i32) -> (i32, i32) {
    %c0_i32 = arith.constant 0 : i32
    %c0_i32_0 = arith.constant 0 : i32
    %c0_i32_1 = arith.constant 0 : i32
    return %c0_i32, %c0_i32_0 : i32, i32
  }
  func.func @transform_5(%arg0: i32) -> (i32, i32) {
    %c0_i32 = arith.constant 0 : i32
    %c0_i32_0 = arith.constant 0 : i32
    %c0_i32_1 = arith.constant 0 : i32
    return %c0_i32, %c0_i32_0 : i32, i32
  }
  func.func @transform_6(%arg0: i32) -> (i32, i32) {
    %c0_i32 = arith.constant 0 : i32
    %c0_i32_0 = arith.constant 0 : i32
    %c0_i32_1 = arith.constant 0 : i32
    return %c0_i32, %c0_i32_0 : i32, i32
  }
  func.func @transform_7(%arg0: i32) -> (i32, i32) {
    %c0_i32 = arith.constant 0 : i32
    %c0_i32_0 = arith.constant 0 : i32
    return %c0_i32, %arg0 : i32, i32
  }
}

</mosaic_0001>

<bundles_post_ra>
// kernel: tpu_custom_call.1
= control target key start
LH: loop header
LB: loop body
LE: loop exit
PB: predicated region body
PF: predicated region fallthrough
CT: control target
= control target key end

     0   :  { %s1547_s0 = inlined_call_operand.vmem [shape: f32[300,4], index: 0, kind: input, shape index: {}]   ;;  %s1548_s1 = inlined_call_operand.vmem [shape: f32[32,4], index: 1, kind: input, shape index: {}]   ;;  %s1549_s2 = inlined_call_operand.vmem [shape: f32[32,1], index: 2, kind: input, shape index: {}]   ;;  %s1550_s3 = inlined_call_operand.vmem [shape: f32[32,32], index: 3, kind: input, shape index: {}]   ;;  %s1551_s4 = inlined_call_operand.vmem [shape: f32[32,1], index: 4, kind: input, shape index: {}]   ;;  %s1552_s5 = inlined_call_operand.vmem [shape: f32[1,32], index: 5, kind: input, shape index: {}]   ;;  %s1553_s6 = inlined_call_operand.<no memory space> [shape: f32[1,1], index: 6, kind: input, shape index: {}]   ;;  %s1554_s7 = inlined_call_operand.hbm [shape: f32[1,300], index: 7, kind: output, shape index: {}]  }
   0x1   :  { %v12_v0 = vstv %s1553_s6 }
   0x2   :  { %13 = vst [vmem:[#allocation2] sm:$0x1] %v12_v0 }
   0x3   :  { %14 = vsyncpa [#allocation4], 0 }
   0x4   :  { %16 = vsyncpa [#allocation4 + $0x1], 0  ;;  %s1291_s26 = smov 0   ;;  %s1293_s27 = smov 0  }
   0x5   :  { %s1295_s28 = smov 0   ;;  %s1297_s29 = smov 0  }
   0x6 LB: > { %s1312_s6 = sadd.s32 4294967295, %s1242_s29   ;;  %s945_s30 = sadd.s32 4294967294, %s1242_s29   ;;  %s1242_s29 = sphi %s1297_s29, %s1562_s29   ;;  %s1238_s28 = sphi %s1295_s28, %s1561_s28   ;;  %s1234_s27 = sphi %s1293_s27, %s1560_s27   ;;  %s1230_s26 = sphi %s1291_s26, %s1559_s26  }
   0x7   : > { %s1316_s8 = sadd.s32 1, %s1242_s29   ;;  %s181_s9 = sadd.s32 1, %s1238_s28 }
   0x8   : > { %s178_s10 = ssub.s32 %s1242_s29, %s1316_s8  ;;  %p191_p0 = scmp.ne.s32.totalorder %s1238_s28, %s1234_s27 }
   0x9   : > { %p179_p1 = scmp.eq.s32.totalorder %s178_s10, 0  ;;  %p192_p2 = scmp.eq.s32.totalorder %s1312_s6, 1 }
   0xa   : > { %p197_p3 = scmp.ne.s32.totalorder %s1234_s27, %s1230_s26  ;;  %p198_p4 = scmp.eq.s32.totalorder %s945_s30, 1 }
   0xb   : > { %s1327_s11 = scalar_select %p179_p1, %s1238_s28, %s181_s9  }
   0xc   : > { %p1329_p5 = por %p192_p2, %p191_p0  ;;  %p1333_p6 = por %p198_p4, %p197_p3 }
   0xd   : > { %p948_p7 = scmp.ge.s32.totalorder %s1242_s29, 1  ;;  %p251_p8 = scmp.lt.s32.totalorder %s1242_s29, 3 }
   0xf   : > { %p252_p9 = pnand %p948_p7, %p251_p8 }
  0x10   : > { %s1340_s14 = sshll.u32 (!%p252_p9), %s1312_s6, 5  ;;  %vm376_vm0 = vcmask (!%p252_p9), 31744   ;;  %v1345_v1 = vld [vmem:[%s1548_s1] sm:$0xff] (!%p252_p9)  ;;  %v1244_v2 = vmov (!%p252_p9), 0   ;;  %v312_v4 = vld [vmem:[%s1549_s2 + $0x10] sm:$0xff] (!%p252_p9)  ;;  %v311_v5 = vld [vmem:[%s1549_s2 + $0x8] sm:$0xff] (!%p252_p9) }
  0x11   : > { %255 = sbr.rel (%p252_p9) target bundleno = 844 (0x34c), region = 48  ;;  %p292_p10 = scmp.lt.s32.totalorder (!%p252_p9), %s1340_s14, 37  ;;  %1033 = vmatprep.mubr.msk.f32.mxu0 (!%p252_p9), %vm376_vm0, %v1345_v1  ;;  %1146 = vset.pattern.permute.xlu0 (!%p252_p9), %v1244_v2  ;;  %v310_v3 = vld [vmem:[%s1549_s2] sm:$0xff] (!%p252_p9)  ;;  %v313_v6 = vld [vmem:[%s1549_s2 + $0x18] sm:$0xff] (!%p252_p9)  ;;  %vm1370_vm1 = vmpackc.low (!%p252_p9), %vm376_vm0, %vm376_vm0  ;;  %v1245_v0 = vmov (!%p252_p9), 0.0   ;;  %vm626_vm2 = vcmask (!%p252_p9), 261120  }
  0x12   : > { %358 = vperm.xlu0 (!%p252_p9), %1146, %v310_v3   ;;  %1147 = vset.pattern.permute.xlu1 (!%p252_p9), %v1244_v2  ;;  %v318_v8 = vld [vmem:[%s1551_s4] sm:$0xff] (!%p252_p9)  ;;  %v319_v9 = vld [vmem:[%s1551_s4 + $0x8] sm:$0xff] (!%p252_p9)  ;;  %v320_v19 = vld [vmem:[%s1551_s4 + $0x10] sm:$0xff] (!%p252_p9) }
  0x13   : > { %368 = vperm.xlu1 (!%p252_p9), %1147, %v312_v4   ;;  %v321_v22 = vld [vmem:[%s1551_s4 + $0x18] sm:$0xff] (!%p252_p9)  ;;  %v323_v26 = vld [vmem:[#allocation2] sm:$0x1] (!%p252_p9)  ;;  %v307_v61 = vld [vmem:[%s1548_s1 + $0x8] sm:$0xff] (!%p252_p9)  ;;  %703 = vmatprep.mubr.f32.mxu1 (!%p252_p9), %v1245_v0 }
  0x14   : > { %v308_v62 = vld [vmem:[%s1548_s1 + $0x10] sm:$0xff] (!%p252_p9)  ;;  %v309_v63 = vld [vmem:[%s1548_s1 + $0x18] sm:$0xff] (!%p252_p9) }
  0x16   : > { %363 = vperm.xlu0 (!%p252_p9), %1146, %v311_v5  }
  0x17   : > { %373 = vperm.xlu1 (!%p252_p9), %1147, %v313_v6  }
  0x18   : > { %s293_s21 = scalar_select %p292_p10, %s1340_s14, 37 }
  0x19   : > { %s994_s16 = sshll.u32 (%p1329_p5), %s1312_s6, 1 }
  0x1a   : > { %s951_s30 = sshll.u32 %s293_s21, 3  ;;  %608 = vperm.xlu0 %1146, %v318_v8   ;;  %s875_s17 = ssub.s32 (%p1329_p5), 3, %s994_s16 }
  0x1b   : > { %s1366_s15 = scalar_lea.vmem %s1547_s0, %s951_s30  ;;  %613 = vperm.xlu1 %1147, %v319_v9   ;;  %s284_s30 = sand.u32 1, %s1234_s27  }
  0x1c   : > { %v340_v10 = vld [vmem:[%s1366_s15 + $0x80] sm:$0xff]  ;;  %v341_v11 = vld [vmem:[%s1366_s15 + $0x88] sm:$0xff]  ;;  %v342_v15 = vld [vmem:[%s1366_s15 + $0x90] sm:$0xff]  ;;  %s949_s9 = sshll.u32 %s284_s30, 1  ;;  %p876_p11 = scmp.lt.s32.totalorder (%p1329_p5), %s875_s17, 2 }
  0x1d   : > { %v324_v12 = vld [vmem:[%s1366_s15] sm:$0xff]  ;;  %v1041_v13 = vpack.c.bf16 %v341_v11, %v340_v10  ;;  %v325_v14 = vld [vmem:[%s1366_s15 + $0x8] sm:$0xff]  ;;  %v343_v16 = vld [vmem:[%s1366_s15 + $0x98] sm:$0xff]  ;;  %s286_s10 = scalar_lea.vmem [#allocation3], %s949_s9 }
  0x1e   : > { %v1044_v17 = vpack.c.bf16 %v325_v14, %v324_v12  ;;  %v1047_v18 = vpack.c.bf16 %v343_v16, %v342_v15  ;;  %v326_v20 = vld [vmem:[%s1366_s15 + $0x10] sm:$0xff]  ;;  %v327_v21 = vld [vmem:[%s1366_s15 + $0x18] sm:$0xff]  ;;  %v344_v23 = vld [vmem:[%s1366_s15 + $0xa0] sm:$0xff]  ;;  %618 = vperm.xlu0 %1146, %v320_v19  }
  0x1f   : > { %1043 = vmatprep.subr.msk.bf16.mxu0 %vm1370_vm1, %v1041_v13  ;;  %v345_v24 = vld [vmem:[%s1366_s15 + $0xa8] sm:$0xff]  ;;  %v1050_v25 = vpack.c.bf16 %v327_v21, %v326_v20  ;;  %623 = vperm.xlu1 %1147, %v321_v22   ;;  %v328_v28 = vld [vmem:[%s1366_s15 + $0x20] sm:$0xff]  ;;  %v346_v30 = vld [vmem:[%s1366_s15 + $0xb0] sm:$0xff] }
  0x20   : > { %1046 = vmatpush3.bf16.xpose.msk.msra.mxu0 %vm1370_vm1, %v1044_v17  ;;  %v1053_v27 = vpack.c.bf16 %v345_v24, %v344_v23  ;;  %v329_v29 = vld [vmem:[%s1366_s15 + $0x28] sm:$0xff]  ;;  %v347_v31 = vld [vmem:[%s1366_s15 + $0xb8] sm:$0xff]  ;;  %v330_v34 = vld [vmem:[%s1366_s15 + $0x30] sm:$0xff] }
  0x21   : > { %1049 = vmatprep.subr.msk.bf16.mxu0 %vm1370_vm1, %v1047_v18  ;;  %v1056_v32 = vpack.c.bf16 %v329_v29, %v328_v28  ;;  %v1059_v33 = vpack.c.bf16 %v347_v31, %v346_v30  ;;  %v331_v35 = vld [vmem:[%s1366_s15 + $0x38] sm:$0xff]  ;;  %v348_v36 = vld [vmem:[%s1366_s15 + $0xc0] sm:$0xff]  ;;  %v349_v37 = vld [vmem:[%s1366_s15 + $0xc8] sm:$0xff] }
  0x22   : > { %762 = vperm.xlu0 %1146, %v323_v26   ;;  %v1062_v38 = vpack.c.bf16 %v331_v35, %v330_v34  ;;  %v1065_v39 = vpack.c.bf16 %v349_v37, %v348_v36  ;;  %v332_v40 = vld [vmem:[%s1366_s15 + $0x40] sm:$0xff]  ;;  %v333_v41 = vld [vmem:[%s1366_s15 + $0x48] sm:$0xff]  ;;  %v350_v42 = vld [vmem:[%s1366_s15 + $0xd0] sm:$0xff] }
  0x23   : > { %v351_v43 = vld [vmem:[%s1366_s15 + $0xd8] sm:$0xff]  ;;  %v1068_v44 = vpack.c.bf16 %v333_v41, %v332_v40  ;;  %v334_v46 = vld [vmem:[%s1366_s15 + $0x50] sm:$0xff]  ;;  %v352_v48 = vld [vmem:[%s1366_s15 + $0xe0] sm:$0xff] }
  0x24   : > { %v1071_v45 = vpack.c.bf16 %v351_v43, %v350_v42  ;;  %v335_v47 = vld [vmem:[%s1366_s15 + $0x58] sm:$0xff]  ;;  %v353_v49 = vld [vmem:[%s1366_s15 + $0xe8] sm:$0xff]  ;;  %v336_v52 = vld [vmem:[%s1366_s15 + $0x60] sm:$0xff] }
  0x25   : > { %v1074_v50 = vpack.c.bf16 %v335_v47, %v334_v46  ;;  %v1077_v51 = vpack.c.bf16 %v353_v49, %v352_v48  ;;  %v337_v53 = vld [vmem:[%s1366_s15 + $0x68] sm:$0xff]  ;;  %v354_v54 = vld [vmem:[%s1366_s15 + $0xf0] sm:$0xff]  ;;  %v355_v55 = vld [vmem:[%s1366_s15 + $0xf8] sm:$0xff] }
  0x26   : > { %v1080_v56 = vpack.c.bf16 %v337_v53, %v336_v52  ;;  %v1083_v57 = vpack.c.bf16 %v355_v55, %v354_v54  ;;  %v338_v58 = vld [vmem:[%s1366_s15 + $0x70] sm:$0xff]  ;;  %v339_v59 = vld [vmem:[%s1366_s15 + $0x78] sm:$0xff]  ;;  %s1493_s15 = scalar_lea.sflag [#allocation4], %s284_s30 }
  0x27   : > { %v1086_v60 = vpack.c.bf16 %v339_v59, %v338_v58  ;;  %v315_v58 = vld [vmem:[%s1550_s3 + $0x8] sm:$0xff]  ;;  %v316_v59 = vld [vmem:[%s1550_s3 + $0x10] sm:$0xff] }
  0x28   : > { %1052 = vmatpush3.bf16.xpose.msk.msra.mxu0 %vm1370_vm1, %v1050_v25 }
  0x29   : > { %1055 = vmatprep.subr.msk.bf16.mxu0 %vm1370_vm1, %v1053_v27 }
  0x30   : > { %1058 = vmatpush3.bf16.xpose.msk.msra.mxu0 %vm1370_vm1, %v1056_v32 }
  0x31   : > { %1061 = vmatprep.subr.msk.bf16.mxu0 %vm1370_vm1, %v1059_v33 }
  0x38   : > { %1064 = vmatpush3.bf16.xpose.msk.msra.mxu0 %vm1370_vm1, %v1062_v38 }
  0x39   : > { %1067 = vmatprep.subr.msk.bf16.mxu0 %vm1370_vm1, %v1065_v39 }
  0x40   : > { %1070 = vmatpush3.bf16.xpose.msk.msra.mxu0 %vm1370_vm1, %v1068_v44 }
  0x41   : > { %1073 = vmatprep.subr.msk.bf16.mxu0 %vm1370_vm1, %v1071_v45 }
  0x48   : > { %1076 = vmatpush3.bf16.xpose.msk.msra.mxu0 %vm1370_vm1, %v1074_v50 }
  0x49   : > { %1079 = vmatprep.subr.msk.bf16.mxu0 %vm1370_vm1, %v1077_v51 }
  0x50   : > { %1082 = vmatpush3.bf16.xpose.msk.msra.mxu0 %vm1370_vm1, %v1080_v56 }
  0x51   : > { %1085 = vmatprep.subr.msk.bf16.mxu0 %vm1370_vm1, %v1083_v57  ;;  %v314_v57 = vld [vmem:[%s1550_s3] sm:$0xff] }
  0x58   : > { %1088 = vmatpush3.bf16.xpose.msk.msra.mxu0 %vm1370_vm1, %v1086_v60  ;;  %v317_v60 = vld [vmem:[%s1550_s3 + $0x18] sm:$0xff] }
  0x5f   : > { %1034 = vmatmul.mubr.msk.f32.vlgmr.msra.gmra.mrb[0].mxu0 %vm376_vm0, %v1345_v1 }
  0x60   : > { %1035 = vmatprep.mubr.msk.f32.mxu0 %vm376_vm0, %v307_v61 }
  0x63   : > { %1036 = vmatmul.mubr.msk.f32.gmra.mrb[2].mxu0 %vm376_vm0, %v307_v61 }
  0x64   : > { %1037 = vmatprep.mubr.msk.f32.mxu0 %vm376_vm0, %v308_v62 }
  0x67   : > { %1038 = vmatmul.mubr.msk.f32.gmra.mrb[4].mxu0 %vm376_vm0, %v308_v62 }
  0x68   : > { %1039 = vmatprep.mubr.msk.f32.mxu0 %vm376_vm0, %v309_v63 }
  0x6b   : > { %1040 = vmatmul.mubr.msk.f32.gmra.mrb[6].mxu0 %vm376_vm0, %v309_v63 }
  0x91   : > { %v359_v1 = vpop.permute.xlu0 %358 }
  0x92   : > { %v369_v12 = vpop.permute.xlu1 %368 }
  0x95   : > { %v364_v7 = vpop.permute.xlu0 %363 }
  0x96   : > { %v374_v21 = vpop.permute.xlu1 %373 }
  0x99   : > { %v609_v61 = vpop.permute.xlu0 %608 }
 0x132   : > { %v551_v2 = vpop.f32.mrb[0].mxu0 }
 0x133   : > { %v552_v3 = vadd.f32 %v551_v2, %v359_v1  ;;  %v553_v4 = vpop.f32.mrb[1].mxu0 }
 0x134   : > { %v554_v5 = vadd.f32 %v553_v4, %v359_v1  ;;  %v614_v4 = vpop.permute.xlu1 %613 }
 0x135   : > { %v574_v6 = vmul.f32 0.5, %v552_v3 }
 0x136   : > { %v575_v8 = vmul.f32 0.5, %v554_v5  ;;  %v557_v9 = vpop.f32.mrb[2].mxu0 }
 0x137   : > { %1148 = vtanh.f32 %v574_v6  ;;  %v558_v10 = vadd.f32 %v557_v9, %v364_v7  ;;  %v559_v11 = vpop.f32.mrb[3].mxu0 }
 0x138   : > { %1150 = vtanh.f32 %v575_v8  ;;  %v560_v13 = vadd.f32 %v559_v11, %v364_v7  ;;  %v619_v11 = vpop.permute.xlu0 %618 }
 0x139   : > { %v576_v14 = vmul.f32 0.5, %v558_v10 }
 0x13a   : > { %v577_v15 = vmul.f32 0.5, %v560_v13  ;;  %v563_v16 = vpop.f32.mrb[4].mxu0 }
 0x13b   : > { %1152 = vtanh.f32 %v576_v14  ;;  %v564_v17 = vadd.f32 %v563_v16, %v369_v12  ;;  %v565_v18 = vpop.f32.mrb[5].mxu0 }
 0x13c   : > { %1154 = vtanh.f32 %v577_v15  ;;  %v566_v19 = vadd.f32 %v565_v18, %v369_v12 }
 0x13d   : > { %v578_v20 = vmul.f32 0.5, %v564_v17  ;;  %v624_v17 = vpop.permute.xlu1 %623 }
 0x13e   : > { %v579_v22 = vmul.f32 0.5, %v566_v19  ;;  %v569_v23 = vpop.f32.mrb[6].mxu0 }
 0x13f   : > { %1156 = vtanh.f32 %v578_v20  ;;  %v570_v24 = vadd.f32 %v569_v23, %v374_v21  ;;  %v571_v25 = vpop.f32.mrb[7].mxu0 }
 0x140   : > { %1158 = vtanh.f32 %v579_v22  ;;  %v572_v26 = vadd.f32 %v571_v25, %v374_v21 }
 0x141   : > { %v1149_v27 = vpop.eup %1148  ;;  %v580_v28 = vmul.f32 0.5, %v570_v24 }
 0x142   : > { %v1151_v29 = vpop.eup %1150  ;;  %v581_v30 = vmul.f32 0.5, %v572_v26  ;;  %v590_v31 = vadd.f32 1.0, %v1149_v27 }
 0x143   : > { %1160 = vtanh.f32 %v580_v28  ;;  %v591_v33 = vadd.f32 1.0, %v1151_v29 }
 0x144   : > { %1162 = vtanh.f32 %v581_v30  ;;  %v598_v37 = vmul.f32 0.5, %v590_v31 }
 0x145   : > { %v1153_v32 = vpop.eup %1152  ;;  %v599_v40 = vmul.f32 0.5, %v591_v33 }
 0x146   : > { %v1155_v34 = vpop.eup %1154  ;;  %v592_v35 = vadd.f32 1.0, %v1153_v32 }
 0x147   : > { %v593_v36 = vadd.f32 1.0, %v1155_v34 }
 0x148   : > { %v600_v38 = vmul.f32 0.5, %v592_v35 }
 0x149   : > { %v1157_v39 = vpop.eup %1156  ;;  %v601_v41 = vmul.f32 0.5, %v593_v36 }
 0x14a   : > { %v1159_v42 = vpop.eup %1158  ;;  %v1091_v43 = vpack.c.bf16 %v600_v38, %v598_v37  ;;  %v594_v45 = vadd.f32 1.0, %v1157_v39 }
 0x14b   : > { %v1089_v44 = vpack.c.bf16 %v601_v41, %v599_v40  ;;  %v595_v47 = vadd.f32 1.0, %v1159_v42 }
 0x14c   : > { %v602_v51 = vmul.f32 0.5, %v594_v45 }
 0x14d   : > { %v1161_v46 = vpop.eup %1160  ;;  %1090 = vmatprep.subr.bf16.mxu1 %v1089_v44  ;;  %v603_v53 = vmul.f32 0.5, %v595_v47 }
 0x14e   : > { %v1163_v48 = vpop.eup %1162  ;;  %v596_v49 = vadd.f32 1.0, %v1161_v46  ;;  %1092 = vmatpush1.bf16.msra.mxu1 %v1091_v43 }
 0x14f   : > { %v597_v50 = vadd.f32 1.0, %v1163_v48 }
 0x150   : > { %v604_v52 = vmul.f32 0.5, %v596_v49 }
 0x151   : > { %v605_v54 = vmul.f32 0.5, %v597_v50 }
 0x152   : > { %v1095_v55 = vpack.c.bf16 %v604_v52, %v602_v51 }
 0x153   : > { %v1093_v56 = vpack.c.bf16 %v605_v54, %v603_v53  ;;  %v322_v53 = vld [vmem:[%s1552_s5] sm:$0x1]  ;;  %v765_v54 = vlaneseq }
 0x155   : > { %1094 = vmatprep.subr.bf16.mxu1 %v1093_v56  ;;  %v1246_v56 = vmov 1966171168   ;;  %vm863_vm3 = vcmp.lt.s32.totalorder %v765_v54, 256 }
 0x156   : > { %1096 = vmatpush1.bf16.msra.mxu1 %v1095_v55  ;;  %v766_v55 = vshrl.u32 %v765_v54, 7 }
 0x159   : > { %988 = vmatmul.mubr.msk.f32.vlgmr.msra.gmra.mrb[0].mxu1 %vm626_vm2, %v314_v57  ;;  %v847_v57 = vunpack.c.l.s4 %v1246_v56 }
 0x15a   : > { %709 = vmatprep.mubr.f32.mxu1 %v1245_v0 }
 0x15d   : > { %989 = vmatmul.mubr.msk.f32.gmra.mrb[2].mxu1 %vm626_vm2, %v315_v58  ;;  %v767_v58 = vsub.s32 0, %v766_v55 }
 0x15e   : > { %715 = vmatprep.mubr.f32.mxu1 %v1245_v0 }
 0x161   : > { %990 = vmatmul.mubr.msk.f32.gmra.mrb[4].mxu1 %vm626_vm2, %v316_v59  ;;  %v763_v59 = vpop.permute.xlu0 %762 }
 0x162   : > { %721 = vmatprep.mubr.f32.mxu1 %v1245_v0 }
 0x165   : > { %991 = vmatmul.mubr.msk.f32.gmra.mrb[6].mxu1 %vm626_vm2, %v317_v60  ;;  %v848_v60 = vunpack.c.0.s8 %v847_v57 }
 0x166   : > { %836 = vmatprep.mubr.f32.mxu1 %v1245_v0 }
 0x22c   : > { %v705_v62 = vpop.f32.mrb[0].mxu1 }
 0x22d   : > { %v706_v63 = vadd.f32 %v705_v62, %v609_v61  ;;  %v707_v1 = vpop.f32.mrb[1].mxu1 }
 0x22e   : > { %v708_v2 = vadd.f32 %v707_v1, %v609_v61  ;;  %v768_v61 = vrot.slane %v763_v59, %v767_v58 }
 0x22f   : > { %v728_v3 = vmul.f32 0.5, %v706_v63 }
 0x230   : > { %v729_v5 = vmul.f32 0.5, %v708_v2  ;;  %v711_v6 = vpop.f32.mrb[2].mxu1 }
 0x231   : > { %1164 = vtanh.f32 %v728_v3  ;;  %v712_v7 = vadd.f32 %v711_v6, %v614_v4  ;;  %v713_v8 = vpop.f32.mrb[3].mxu1  ;;  %v851_v3 = vsub.s32 %v848_v60, %v766_v55 }
 0x232   : > { %1166 = vtanh.f32 %v729_v5  ;;  %v714_v9 = vadd.f32 %v713_v8, %v614_v4 }
 0x233   : > { %v730_v10 = vmul.f32 0.5, %v712_v7 }
 0x234   : > { %v731_v12 = vmul.f32 0.5, %v714_v9  ;;  %v717_v13 = vpop.f32.mrb[4].mxu1 }
 0x235   : > { %1168 = vtanh.f32 %v730_v10  ;;  %v718_v0 = vadd.f32 %v717_v13, %v619_v11  ;;  %v719_v14 = vpop.f32.mrb[5].mxu1 }
 0x236   : > { %1170 = vtanh.f32 %v731_v12  ;;  %v720_v15 = vadd.f32 %v719_v14, %v619_v11 }
 0x237   : > { %v732_v16 = vmul.f32 0.5, %v718_v0 }
 0x238   : > { %v733_v18 = vmul.f32 0.5, %v720_v15  ;;  %v723_v19 = vpop.f32.mrb[6].mxu1 }
 0x239   : > { %1172 = vtanh.f32 %v732_v16  ;;  %v724_v20 = vadd.f32 %v723_v19, %v624_v17  ;;  %v725_v21 = vpop.f32.mrb[7].mxu1 }
 0x23a   : > { %1174 = vtanh.f32 %v733_v18  ;;  %v726_v22 = vadd.f32 %v725_v21, %v624_v17 }
 0x23b   : > { %v1165_v23 = vpop.eup %1164  ;;  %v734_v24 = vmul.f32 0.5, %v724_v20 }
 0x23c   : > { %v1167_v25 = vpop.eup %1166  ;;  %v735_v26 = vmul.f32 0.5, %v726_v22  ;;  %v744_v27 = vadd.f32 1.0, %v1165_v23 }
 0x23d   : > { %1176 = vtanh.f32 %v734_v24  ;;  %v745_v29 = vadd.f32 1.0, %v1167_v25 }
 0x23e   : > { %1178 = vtanh.f32 %v735_v26  ;;  %v752_v33 = vmul.f32 0.5, %v744_v27 }
 0x23f   : > { %v1169_v28 = vpop.eup %1168  ;;  %v753_v36 = vmul.f32 0.5, %v745_v29 }
 0x240   : > { %v1171_v30 = vpop.eup %1170  ;;  %v746_v31 = vadd.f32 1.0, %v1169_v28 }
 0x241   : > { %v747_v32 = vadd.f32 1.0, %v1171_v30 }
 0x242   : > { %v754_v34 = vmul.f32 0.5, %v746_v31 }
 0x243   : > { %v1173_v35 = vpop.eup %1172  ;;  %v755_v37 = vmul.f32 0.5, %v747_v32 }
 0x244   : > { %v1175_v38 = vpop.eup %1174  ;;  %v1099_v39 = vpack.c.bf16 %v754_v34, %v752_v33  ;;  %v748_v41 = vadd.f32 1.0, %v1173_v35 }
 0x245   : > { %v1097_v40 = vpack.c.bf16 %v755_v37, %v753_v36  ;;  %v749_v43 = vadd.f32 1.0, %v1175_v38 }
 0x246   : > { %v756_v47 = vmul.f32 0.5, %v748_v41 }
 0x247   : > { %v1177_v42 = vpop.eup %1176  ;;  %1098 = vmatprep.subr.bf16.mxu1 %v1097_v40  ;;  %v757_v49 = vmul.f32 0.5, %v749_v43 }
 0x248   : > { %v1179_v44 = vpop.eup %1178  ;;  %v750_v45 = vadd.f32 1.0, %v1177_v42  ;;  %1100 = vmatpush1.bf16.msra.mxu1 %v1099_v39 }
 0x249   : > { %v751_v46 = vadd.f32 1.0, %v1179_v44 }
 0x24a   : > { %v758_v48 = vmul.f32 0.5, %v750_v45 }
 0x24b   : > { %v759_v50 = vmul.f32 0.5, %v751_v46 }
 0x24c   : > { %v1103_v51 = vpack.c.bf16 %v758_v48, %v756_v47 }
 0x24d   : > { %v1101_v52 = vpack.c.bf16 %v759_v50, %v757_v49 }
 0x24f   : > { %1102 = vmatprep.subr.bf16.mxu1 %v1101_v52 }
 0x250   : > { %1104 = vmatpush1.bf16.msra.mxu1 %v1103_v51 }
 0x253   : > { %992 = vmatmul.mubr.msk.f32.vlgmr.msra.gmra.mrb[8].mxu1 %vm626_vm2, %v322_v53 }
 0x326   : > { %v838_v62 = vpop.f32.mrb[8].mxu1 }
 0x327   : > { %v839_v63 = vadd.f32 %v838_v62, %v768_v61  ;;  %v840_v1 = vpop.f32.mrb[9].mxu1 }
 0x328   : > { %v841_v2 = vadd.f32 %v840_v1, %v768_v61 }
 0x32a   : > { %v845_v4 = vcombine.low %v839_v63, %v841_v2  ;;  %873 = sbr.rel (!%p1329_p5) target bundleno = 844 (0x34c), region = 52 }
 0x32c   : > { %v852_v5 = vrot.slane %v845_v4, %v851_v3 }
 0x32e   : > { %v859_v6 = vrot.slane %v852_v5, %v851_v3 }
 0x330   : > { %865 = vst.msk [vmem:[%s286_s10] sm:$0x3] %vm863_vm3, %v859_v6 }
 0x331   : > { %s1564_s17 = smov (!%p876_p11, %s875_s17), 2 }
 0x332   : > { %s1498_s18 = sshll.u32 %s1564_s17, 4 }
 0x333   : > { %s880_s19 = ssub.s32 32, %s1498_s18 }
 0x334   : > { %881 = vsyncadd %s1493_s15, %s880_s19  ;;  %p996_p12 = scmp.ne.s32.totalorder %s1498_s18, 0  ;;  %s1507_s12 = scalar_lea.hbm %s1554_s7, %s1340_s14 }
 0x335   : > { %s886_s22 = sshll.u32 %s286_s10, 4  ;;  %s1247_s23 = smov [#allocation3]   ;;  %s887_s22 = int_to_ptr.vmem [resolvable:$true] %s886_s22 }
 0x336   : > { %s1180_s6 = scalar_lea.vmem %s887_s22, %s1498_s18  ;;  %s1184_s24 = sshll.u32 %s1247_s23, 4  ;;  %s1185_s24 = int_to_ptr.vmem [resolvable:$false] %s1184_s24 }
 0x337   : > { %p1181_p13 = scmp.ne.s32.totalorder %s887_s22, %s1180_s6  ;;  %s1186_s25 = scalar_lea.vmem %s1185_s24, 64 }
 0x338   : > { %p1187_p2 = scmp.lt.s32.totalorder %s887_s22, %s1185_s24  ;;  %p1188_p3 = scmp.lt.s32.totalorder %s1186_s25, %s1180_s6 }
 0x339   : > { %p1182_p0 = pnand %p1181_p13, %p996_p12 }
 0x33a   : > { %p1189_p4 = por %p1188_p3, %p1187_p2 }
 0x33b   : > { %p1183_p1 = pneg %p1182_p0 }
 0x33d   : > { %p1190_p5 = pnand %p1189_p4, %p1183_p1 }
 0x33f   : > { %1193 = shalt.err (!%p1190_p5)
}
 0x340   : > { %s1194_s14 = scalar_lea.hbm %s1507_s12, %s1498_s18  ;;  %s1198_s10 = scalar_lea.hbm %s1554_s7, 48 }
 0x341   : > { %p1195_p7 = scmp.ne.s32.totalorder %s1507_s12, %s1194_s14  ;;  %p1199_p10 = scmp.lt.u32.totalorder %s1507_s12, %s1554_s7 }
 0x342   : > { %p1200_p11 = scmp.lt.u32.totalorder %s1198_s10, %s1194_s14  ;;  %p1202_p0 = scmp.lt.u32.totalorder %s1194_s14, %s1507_s12 }
 0x343   : > { %p1196_p8 = pnand %p1195_p7, %p996_p12 }
 0x344   : > { %p1201_p13 = por %p1200_p11, %p1199_p10 }
 0x345   : > { %p1197_p9 = pneg %p1196_p8 }
 0x346   : > { %p1203_p1 = por %p1202_p0, %p1201_p13 }
 0x348   : > { %p1204_p2 = pnand %p1203_p1, %p1197_p9 }
 0x34a   : > { %1207 = shalt.err (!%p1204_p2)
}
 0x34b   : > { %889 = dma.vmem_to_hbm [thread:$0]  (%p996_p12), %s887_s22, %s1498_s18, %s1507_s12, %s1493_s15  }
 0x34c PF: > { %p1110_p3 = scmp.ge.s32.totalorder %s1242_s29, 2  ;;  %s898_s19 = sand.u32 1, %s1230_s26  }
 0x34d   : > { %s899_s20 = scalar_lea.sflag [#allocation4], %s898_s19 }
 0x34e   : > { %p1107_p4 = pnand %p1110_p3, %p1333_p6 }
 0x350   : > { %1225 = dma.done.wait (!%p1107_p4), %s899_s20, 32  }
 0x351   : > { %1227 = vsyncadd (!%p1107_p4), %s899_s20, 4294967264  ;;  %p19_p5 = scmp.ge.s32.totalorder %s1316_s8, 4   ;;  %s1559_s26 = smov %s1234_s27 }
 0x352   : > { %s1560_s27 = smov %s1238_s28  ;;  %s1561_s28 = smov %s1327_s11 }
 0x353   : > { %s1562_s29 = smov %s1316_s8  ;;  %21 = sbr.rel (!%p19_p5) target bundleno = 6 (0x6), region = 83 }
 0x35a   :  { %904 = vsyncpa [#allocation4], 1 }
 0x35b   :  { %906 = vsyncpa [#allocation4 + $0x1], 1 }

</bundles_post_ra>
